<compile_context>
chip_gen: v7x
topology: tpu7x:2x2x1
jax: 0.10.0
libtpu: 0.0.40
codegen_flags: <defaults>
</compile_context>

<pallas_src>
import functools

import jax
import jax.numpy as jnp
from jax import lax
from jax.experimental import pallas as pl
from jax.experimental.pallas import tpu as pltpu


def _round_up(x, m):
    return ((x + m - 1) // m) * m


def _proj_kernel(x_ref, w_ref, b_ref, o_ref):
    # x_ref: (tm, D) [bf16], w_ref: (C_pad, D) [bf16], b_ref: (1, C_pad) [f32],
    # o_ref: (tm, C_pad) [out dtype]
    acc = lax.dot_general(
        x_ref[...], w_ref[...],
        dimension_numbers=(((1,), (1,)), ((), ())),   # contract on D: x @ W.T
        preferred_element_type=jnp.float32,
    )
    o_ref[...] = (acc + b_ref[...]).astype(o_ref.dtype)


@functools.partial(jax.jit, static_argnames=("patch_size", "compute_dtype"))
def per_patch_fully_connected(x, weight, bias, *, patch_size,
                              compute_dtype=jnp.bfloat16):
    """x: (B, C_in, H, W); weight: (C, D) [torch layout]; bias: (C,)."""
    B, C_in, H, W = x.shape
    S = (H * W) // (patch_size * patch_size)
    D = C_in * patch_size * patch_size
    C = weight.shape[0]
    out_dtype = x.dtype

    M = B * S

    # Glue: row-major reshape, identical semantics to torch.reshape on contiguous NCHW.
    x2d = x.reshape(M, D).astype(compute_dtype)

    # Lane-dense output: pad channel dim up to a multiple of 128 (zeros), slice after.
    C_pad = _round_up(C, 128)
    w_p = jnp.pad(weight, ((0, C_pad - C), (0, 0))).astype(compute_dtype)      # (C_pad, D)
    b_p = jnp.pad(bias, (0, C_pad - C)).astype(jnp.float32).reshape(1, C_pad)  # (1, C_pad)

    # M tile: as large as reasonable to amortize per-step overhead; multiple of 8
    # (512 fits comfortably inside even the v7x 32 MiB scoped-VMEM default with
    # these small D/C_pad working sets).
    tm = M if M <= 512 else 512
    grid = (pl.cdiv(M, tm),)   # ragged tail handled by blocked specs

    itemsize_in = jnp.dtype(compute_dtype).itemsize
    itemsize_out = jnp.dtype(out_dtype).itemsize
    cost = pl.CostEstimate(
        flops=2 * M * D * C_pad,
        transcendentals=0,
        bytes_accessed=(M * D * itemsize_in          # activations in
                        + C_pad * D * itemsize_in    # weights in
                        + C_pad * 4                  # bias in
                        + M * C_pad * itemsize_out), # output
    )

    out2d = pl.pallas_call(
        _proj_kernel,
        out_shape=jax.ShapeDtypeStruct((M, C_pad), out_dtype),
        grid_spec=pl.GridSpec(
            grid=grid,
            in_specs=[
                pl.BlockSpec((tm, D), lambda i: (i, 0)),       # activations: tile rows
                pl.BlockSpec((C_pad, D), lambda i: (0, 0)),    # weights: resident
                pl.BlockSpec((1, C_pad), lambda i: (0, 0)),    # bias: resident
            ],
            out_specs=pl.BlockSpec((tm, C_pad), lambda i: (i, 0)),
        ),
        compiler_params=pltpu.CompilerParams(
            dimension_semantics=("parallel",),
        ),
        cost_estimate=cost,
    )(x2d, w_p, b_p)

    return out2d[:, :C].reshape(B, S, C)


if __name__ == "__main__":
    # Small shapes consistent with the module:
    # input_size = (4, 16, 16), patch_size = 4  =>  S = 16, D = 64 ; hidden C = 32 ; batch = 2
    B, C_in, H, W = 2, 4, 16, 16
    patch_size = 4
    C_hidden = 32
    D = C_in * patch_size * patch_size

    key = jax.random.PRNGKey(0)
    kx, kw, kb = jax.random.split(key, 3)

    x = jax.random.normal(kx, (B, C_in, H, W), dtype=jnp.float32)

    # Deterministic nn.Linear-style init: U(-1/sqrt(D), 1/sqrt(D))
    bound = 1.0 / (D ** 0.5)
    weight = jax.random.uniform(kw, (C_hidden, D), minval=-bound, maxval=bound,
                                dtype=jnp.float32)
    bias = jax.random.uniform(kb, (C_hidden,), minval=-bound, maxval=bound,
                              dtype=jnp.float32)

    y = per_patch_fully_connected(x, weight, bias, patch_size=patch_size)
    y = jax.block_until_ready(y)

    # Reference in plain JAX, same precision path (bf16 inputs, f32 accumulate + bias).
    S = (H * W) // (patch_size * patch_size)
    x_c = x.astype(jnp.bfloat16).astype(jnp.float32)
    w_c = weight.astype(jnp.bfloat16).astype(jnp.float32)
    ref = x_c.reshape(B, S, D) @ w_c.T + bias

    assert y.shape == (B, S, C_hidden)
    assert y.dtype == x.dtype
    assert jnp.allclose(y, ref, atol=1e-2, rtol=1e-2), float(jnp.max(jnp.abs(y - ref)))

    print("KERNEL_OK")
</pallas_src>

<mosaic_0001>
module attributes {stable_mosaic.version = 11 : i64} {
  func.func @_proj_kernel(%arg0: i32, %arg1: memref<32x64xbf16, #tpu.memory_space<vmem>>, %arg2: memref<128x64xbf16, #tpu.memory_space<vmem>>, %arg3: memref<1x128xf32, #tpu.memory_space<vmem>>, %arg4: memref<32x128xf32, #tpu.memory_space<vmem>>) attributes {dimension_semantics = [#tpu.dimension_semantics<parallel>], iteration_bounds = array<i64: 1>, scalar_prefetch = 0 : i64, scratch_operands = 0 : i64, tpu.core_type = #tpu.core_type<tc>, window_params = [{transform_indices = @transform_0, window_bounds = array<i64: 32, 64>}, {pipeline_mode = #tpu.pipeline_mode<synchronous>, transform_indices = @transform_1, window_bounds = array<i64: 128, 64>}, {pipeline_mode = #tpu.pipeline_mode<synchronous>, transform_indices = @transform_2, window_bounds = array<i64: 1, 128>}, {transform_indices = @transform_3, window_bounds = array<i64: 32, 128>}]} {
    %c0 = arith.constant 0 : index
    %c0_0 = arith.constant 0 : index
    %0 = vector.load %arg1[%c0, %c0_0] : memref<32x64xbf16, #tpu.memory_space<vmem>>, vector<32x64xbf16>
    %c0_1 = arith.constant 0 : index
    %c0_2 = arith.constant 0 : index
    %1 = vector.load %arg2[%c0_1, %c0_2] : memref<128x64xbf16, #tpu.memory_space<vmem>>, vector<128x64xbf16>
    %cst = arith.constant dense<0.000000e+00> : vector<32x128xf32>
    %2 = tpu.matmul %0, %1, %cst {dimension_numbers = #tpu.dot_dimension_numbers<[1], [1], [0], [0], [0, 0, 1, 0], [], []>} : vector<32x64xbf16>, vector<128x64xbf16>, vector<32x128xf32> -> vector<32x128xf32>
    %c0_3 = arith.constant 0 : index
    %c0_4 = arith.constant 0 : index
    %3 = vector.load %arg3[%c0_3, %c0_4] : memref<1x128xf32, #tpu.memory_space<vmem>>, vector<1x128xf32>
    %4 = vector.broadcast %3 : vector<1x128xf32> to vector<32x128xf32>
    %5 = arith.addf %2, %4 : vector<32x128xf32>
    %c0_5 = arith.constant 0 : index
    %c0_6 = arith.constant 0 : index
    %6 = vector.load %arg4[%c0_5, %c0_6] : memref<32x128xf32, #tpu.memory_space<vmem>>, vector<32x128xf32>
    tpu.vector_store %arg4[%c0_5, %c0_6], %5 {strides = array<i32>} : memref<32x128xf32, #tpu.memory_space<vmem>>, vector<32x128xf32>,
    return
  }
  func.func @transform_0(%arg0: i32) -> (i32, i32) {
    %c0_i32 = arith.constant 0 : i32
    %c0_i32_0 = arith.constant 0 : i32
    return %arg0, %c0_i32 : i32, i32
  }
  func.func @transform_1(%arg0: i32) -> (i32, i32) {
    %c0_i32 = arith.constant 0 : i32
    %c0_i32_0 = arith.constant 0 : i32
    %c0_i32_1 = arith.constant 0 : i32
    return %c0_i32, %c0_i32_0 : i32, i32
  }
  func.func @transform_2(%arg0: i32) -> (i32, i32) {
    %c0_i32 = arith.constant 0 : i32
    %c0_i32_0 = arith.constant 0 : i32
    %c0_i32_1 = arith.constant 0 : i32
    return %c0_i32, %c0_i32_0 : i32, i32
  }
  func.func @transform_3(%arg0: i32) -> (i32, i32) {
    %c0_i32 = arith.constant 0 : i32
    %c0_i32_0 = arith.constant 0 : i32
    return %arg0, %c0_i32 : i32, i32
  }
}

</mosaic_0001>

<bundles_post_ra>
// kernel: per_patch_fully_connected.1
= control target key start
LH: loop header
LB: loop body
LE: loop exit
PB: predicated region body
PF: predicated region fallthrough
CT: control target
= control target key end

     0   :  { %vm93_vm0 = vcmask 523264   ;;  %s367_s0 = inlined_call_operand.vmem [shape: bf16[32,64], index: 0, kind: input, shape index: {}]   ;;  %s368_s1 = inlined_call_operand.vmem [shape: bf16[128,64], index: 1, kind: input, shape index: {}]   ;;  %s369_s2 = inlined_call_operand.vmem [shape: f32[1,128], index: 2, kind: input, shape index: {}]   ;;  %s370_s3 = inlined_call_operand.hbm [shape: f32[32,128], index: 3, kind: output, shape index: {}]  }
   0x1   :  { %v247_v0 = vld [vmem:[%s368_s1] sm:$0xff]   ;;  %v248_v1 = vld [vmem:[%s368_s1 + $0x8] sm:$0xff]   ;;  %v249_v3 = vld [vmem:[%s368_s1 + $0x10] sm:$0xff]  }
   0x2   :  { %236 = vmatprep.subr.msk.bf16.mxu0 %vm93_vm0, %v247_v0  ;;  %v101_v2 = vsel %vm93_vm0, %v247_v0, 0  ;;  %v104_v4 = vsel %vm93_vm0, %v248_v1, 0  ;;  %v255_v5 = vld [vmem:[%s367_s0] sm:$0xff]  }
   0x3   :  { %217 = vmatpush3.bf16.xpose.msra.mxu0 %v101_v2  ;;  %232 = vmatprep.mubr.msk.bf16.mxu0 %vm93_vm0, %v255_v5 }
   0x4   :  { %237 = vmatprep.subr.msk.bf16.mxu0 %vm93_vm0, %v248_v1 }
   0x5   :  { %8 = vsyncpa [#allocation3], 0  ;;  %v107_v6 = vsel %vm93_vm0, %v249_v3, 0  ;;  %v250_v7 = vld [vmem:[%s368_s1 + $0x18] sm:$0xff]   ;;  %v251_v9 = vld [vmem:[%s368_s1 + $0x20] sm:$0xff]   ;;  %s281_s7 = smov [#allocation2]  }
   0x6   :  { %v110_v8 = vsel %vm93_vm0, %v250_v7, 0  ;;  %v113_v10 = vsel %vm93_vm0, %v251_v9, 0  ;;  %v252_v11 = vld [vmem:[%s368_s1 + $0x28] sm:$0xff]   ;;  %v253_v13 = vld [vmem:[%s368_s1 + $0x30] sm:$0xff]   ;;  %v254_v15 = vld [vmem:[%s368_s1 + $0x38] sm:$0xff]   ;;  %s182_s8 = sshll.u32 %s281_s7, 4  ;;  %s183_s8 = int_to_ptr.vmem [resolvable:$true] %s182_s8 }
   0x7   :  { %v116_v12 = vsel %vm93_vm0, %v252_v11, 0  ;;  %v119_v14 = vsel %vm93_vm0, %v253_v13, 0  ;;  %v122_v16 = vsel %vm93_vm0, %v254_v15, 0  ;;  %v256_v17 = vld [vmem:[%s367_s0 + $0x8] sm:$0xff]   ;;  %v193_v18 = vld [vmem:[%s369_s2] ss:$0 sm:$0xff]  ;;  %p262_p1 = scmp.lt.s32.totalorder %s183_s8, %s183_s8 }
   0x8   :  { %s257_s0 = scalar_lea.vmem %s183_s8, 512 }
   0x9   :  { %p258_p0 = scmp.ne.s32.totalorder %s183_s8, %s257_s0  ;;  %p263_p2 = scmp.lt.s32.totalorder %s257_s0, %s257_s0 }
   0xb   :  { %219 = vmatpush3.bf16.xpose.msra.mxu0 %v104_v4  ;;  %p264_p3 = por %p263_p2, %p262_p1 }
   0xc   :  { %238 = vmatprep.subr.msk.bf16.mxu0 %vm93_vm0, %v249_v3 }
   0xd   :  { %p265_p4 = pnand %p264_p3, %p258_p0 }
  0x13   :  { %221 = vmatpush3.bf16.xpose.msra.mxu0 %v107_v6 }
  0x14   :  { %239 = vmatprep.subr.msk.bf16.mxu0 %vm93_vm0, %v250_v7 }
  0x1b   :  { %223 = vmatpush3.bf16.xpose.msra.mxu0 %v110_v8 }
  0x1c   :  { %240 = vmatprep.subr.msk.bf16.mxu0 %vm93_vm0, %v251_v9 }
  0x23   :  { %225 = vmatpush3.bf16.xpose.msra.mxu0 %v113_v10 }
  0x24   :  { %241 = vmatprep.subr.msk.bf16.mxu0 %vm93_vm0, %v252_v11 }
  0x2b   :  { %227 = vmatpush3.bf16.xpose.msra.mxu0 %v116_v12 }
  0x2c   :  { %242 = vmatprep.subr.msk.bf16.mxu0 %vm93_vm0, %v253_v13 }
  0x33   :  { %229 = vmatpush3.bf16.xpose.msra.mxu0 %v119_v14 }
  0x34   :  { %243 = vmatprep.subr.msk.bf16.mxu0 %vm93_vm0, %v254_v15 }
  0x3b   :  { %231 = vmatpush3.bf16.xpose.msra.mxu0 %v122_v16 }
  0x42   :  { %233 = vmatmul.mubr.msk.bf16.vlgmr.msra.gmra.mrb[0].mxu0 %vm93_vm0, %v256_v17 }
 0x115   :  { %v234_v19 = vpop.f32.mrb[0].mxu0 }
 0x116   :  { %v167_v20 = vadd.f32 %v234_v19, %v193_v18  ;;  %v158_v21 = vpop.f32.mrb[1].mxu0 }
 0x117   :  { %v159_v22 = vadd.f32 %v193_v18, %v158_v21  ;;  %v235_v23 = vpop.f32.mrb[2].mxu0 }
 0x118   :  { %175 = vst [vmem:[#allocation2 + $0x10] sm:$0xff] %v167_v20  ;;  %v170_v24 = vadd.f32 %v235_v23, %v193_v18  ;;  %v161_v25 = vpop.f32.mrb[3].mxu0 }
 0x119   :  { %173 = vst [vmem:[#allocation2] sm:$0xff] %v159_v22  ;;  %v162_v26 = vadd.f32 %v193_v18, %v161_v25 }
 0x11a   :  { %176 = vst [vmem:[#allocation2 + $0x18] sm:$0xff] %v170_v24 }
 0x11b   :  { %174 = vst [vmem:[#allocation2 + $0x8] sm:$0xff] %v162_v26 }
 0x11c   :  { %268 = shalt.err (!%p265_p4)
}
 0x11d   :  { %s269_s9 = scalar_lea.hbm %s370_s3, 512 }
 0x11e   :  { %p270_p5 = scmp.ne.s32.totalorder %s370_s3, %s269_s9  ;;  %p273_p6 = scmp.lt.u32.totalorder %s269_s9, %s370_s3 }
 0x120   :  { %p275_p7 = pnand %p273_p6, %p270_p5 }
 0x122   :  { %278 = shalt.err (!%p275_p7)
}
 0x123   :  { %s282_s14 = smov 128   ;;  %s283_s15 = smov 8  }
 0x124   :  { %188 = dma.vmem_to_hbm [thread:$0]  %s183_s8, 512, %s370_s3, [#allocation3], %s282_s14, %s282_s14, %s283_s15  }
 0x125   :  { %279 = dma.done.wait [#allocation3], 512  }
 0x126   :  { %280 = vsyncadd [#allocation3], 4294966784 }
 0x127   :  { %192 = vsyncpa [#allocation3], 1 }

</bundles_post_ra>
